<compile_context>
chip_gen: v5e
topology: v5e:2x2
jax: 0.10.0
libtpu: 0.0.40
codegen_flags: <defaults>
</compile_context>

<pallas_src>
import functools

import jax
import jax.numpy as jnp
from jax.experimental import pallas as pl
from jax.experimental.pallas import tpu as pltpu


# ---------------------------------------------------------------------------
# Kernels
# ---------------------------------------------------------------------------

def _bfc_single_kernel(x_ref, w1_ref, gamma_ref, beta_ref, w2_ref, b2_ref,
                       o_ref, *, d, matmul_dtype):
    """Single full-batch block (grid=())."""
    x = x_ref[:, :d].astype(matmul_dtype)                             # [B, D]

    # Linear-1 on the MXU, f32 accumulation. b1 dropped (cancelled by BN mean).
    h = jnp.dot(x, w1_ref[...], preferred_element_type=jnp.float32)   # [B, H]

    # BatchNorm1d (training mode: batch mean, biased var, eps=1e-5), folded
    # into a single scale; centered value reused for the variance.
    mean = jnp.mean(h, axis=0, keepdims=True)                         # [1, H]
    hc = h - mean                                                     # [B, H]
    var = jnp.mean(hc * hc, axis=0, keepdims=True)                    # [1, H]
    scale = gamma_ref[...] * jax.lax.rsqrt(var + 1e-5)                # [1, H]
    a = hc * scale + beta_ref[...]                                    # [B, H]

    # LeakyReLU (negative_slope = 0.01)
    a = jnp.where(a > 0, a, 0.01 * a)

    # Linear-2 (H -> 1): VPU multiply + lane reduction (no N=1 MXU matmul).
    logits = jnp.sum(a * w2_ref[...], axis=-1, keepdims=True) + b2_ref[0]
    o_ref[...] = jax.nn.sigmoid(logits).astype(o_ref.dtype)


def _bfc_tiled_kernel(x_ref, w1_ref, gamma_ref, beta_ref, w2_ref, b2_ref,
                      o_ref, h_all, sum_s, sumsq_s,
                      *, d, tile_b, num_tiles, valid_b, matmul_dtype):
    """Batch-tiled path: grid=(num_tiles,) ('arbitrary').

    Per step: matmul the x tile, stash h in a resident VMEM scratch, and
    accumulate per-feature sum / sum-of-squares.  On the last step, finish the
    BN stats and run normalize -> LeakyReLU -> Linear-2 -> Sigmoid tile by
    tile without re-reading x from HBM.
    """
    i = pl.program_id(0)

    @pl.when(i == 0)
    def _():
        sum_s[...] = jnp.zeros_like(sum_s)
        sumsq_s[...] = jnp.zeros_like(sumsq_s)

    x = x_ref[:, :d].astype(matmul_dtype)                             # [T, D]
    h = jnp.dot(x, w1_ref[...], preferred_element_type=jnp.float32)   # [T, H]

    row0 = pl.multiple_of(i * tile_b, tile_b)
    h_all[pl.ds(row0, tile_b), :] = h
    # Zero-padded batch rows produce exactly zero h (no bias before BN), so
    # dividing by the true batch size below keeps the statistics exact.
    sum_s[...] += jnp.sum(h, axis=0, keepdims=True)
    sumsq_s[...] += jnp.sum(h * h, axis=0, keepdims=True)

    @pl.when(i == num_tiles - 1)
    def _():
        inv_n = 1.0 / jnp.float32(valid_b)
        mean = sum_s[...] * inv_n                                     # [1, H]
        var = sumsq_s[...] * inv_n - mean * mean                      # [1, H]
        scale = gamma_ref[...] * jax.lax.rsqrt(var + 1e-5)            # [1, H]
        shift = beta_ref[...] - mean * scale                          # [1, H]
        w2 = w2_ref[...]
        b2 = b2_ref[0]

        def body(t, carry):
            r0 = pl.multiple_of(t * tile_b, tile_b)
            a = h_all[pl.ds(r0, tile_b), :] * scale + shift
            a = jnp.where(a > 0, a, 0.01 * a)
            logits = jnp.sum(a * w2, axis=-1, keepdims=True) + b2
            o_ref[pl.ds(r0, tile_b), :] = jax.nn.sigmoid(logits).astype(o_ref.dtype)
            return carry

        jax.lax.fori_loop(0, num_tiles, body, 0)


# ---------------------------------------------------------------------------
# Wrapper
# ---------------------------------------------------------------------------

def _round_up(n, m):
    return ((n + m - 1) // m) * m


def _vmem_cap_bytes():
    """Generation-gated VMEM request cap."""
    phys = 128 * 1024 * 1024
    try:
        info = pltpu.get_tpu_info()
        phys = int(getattr(info, "vmem_capacity_bytes", phys) or phys)
    except Exception:
        pass
    if phys <= 64 * 1024 * 1024:           # v7x-class: 64 MiB physical VMEM
        return 52 * 1024 * 1024
    return 100 * 1024 * 1024               # v5e / v6e: 128 MiB physical VMEM


def basic_fully_connection(x, params, *, matmul_dtype=jnp.bfloat16,
                           batch_tile=512, force_tiled=False):
    """Forward pass of BasicFullyConnection as a fused Pallas TPU kernel.

    x: [B, D] or [B, S, F] (PyTorch uses x[:, -1, :-2] for 3-D, so D = F - 2).
       x is DMA'd in its incoming dtype (bf16 preferred); matmul accumulation
       and BN/activation math are always f32.
    params: dict with w1 [D,H], b1 (ignored: training-mode BN cancels it),
            gamma [1,H], beta [1,H], w2 [H,1], b2 [1,1].
    """
    was_3d = (x.ndim == 3)
    if was_3d:
        # Strided slice: reads only B*F elements (not the whole [B,S,F]);
        # the kernel then sees a dense [B, F] block (B sublanes, F lanes).
        x = x[:, -1, :]
    B, F = x.shape
    D = F - 2 if was_3d else F
    H = params["w1"].shape[1]

    x_it = jnp.dtype(x.dtype).itemsize
    mm_it = jnp.dtype(matmul_dtype).itemsize

    w1 = params["w1"].astype(matmul_dtype)            # pre-cast: halves w1 DMA for bf16
    gamma = params["gamma"].reshape(1, H).astype(jnp.float32)
    beta = params["beta"].reshape(1, H).astype(jnp.float32)
    w2_row = params["w2"].reshape(1, H).astype(jnp.float32)
    b2 = params["b2"].reshape((1,)).astype(jnp.float32)    # -> SMEM scalar

    lane_F = _round_up(F, 128)
    lane_H = _round_up(H, 128)
    sub_x = 16 if x_it < 4 else 8

    full = lambda shape: pl.BlockSpec(shape, lambda *_: (0,) * len(shape))
    smem_spec = pl.BlockSpec(memory_space=pltpu.MemorySpace.SMEM)

    cap = _vmem_cap_bytes()

    # Accurate single-block VMEM estimate: lane/sublane padded, last token only,
    # no double-buffering factor (grid=() has no pipeline).
    need_single = (
        _round_up(B, sub_x) * lane_F * x_it            # x block
        + _round_up(D, 8) * lane_H * mm_it             # w1
        + 3 * 8 * lane_H * 4                           # gamma / beta / w2 row
        + 4 * _round_up(B, 8) * lane_H * 4             # h + elementwise temporaries
        + _round_up(B, 8) * 128 * 4                    # output (lane-padded)
        + (4 << 20))                                   # compiler scratch headroom

    use_tiled = force_tiled or (need_single > cap)

    if not use_tiled:
        kernel = functools.partial(_bfc_single_kernel, d=D,
                                   matmul_dtype=matmul_dtype)
        return pl.pallas_call(
            kernel,
            out_shape=jax.ShapeDtypeStruct((B, 1), jnp.float32),
            grid=(),
            in_specs=[full((B, F)), full((D, H)), full((1, H)), full((1, H)),
                      full((1, H)), smem_spec],
            out_specs=full((B, 1)),
            compiler_params=pltpu.CompilerParams(
                vmem_limit_bytes=int(min(max(32 << 20, need_single), cap))),
        )(x, w1, gamma, beta, w2_row, b2)

    # ------------------------- batch-tiled path -------------------------
    tile_b = max(sub_x, _round_up(min(batch_tile, B), sub_x))
    B_pad = _round_up(B, tile_b)
    if B_pad != B:
        # Zero rows contribute exactly zero to the BN sums (no bias before BN).
        x = jnp.pad(x, ((0, B_pad - B), (0, 0)))
    num_tiles = B_pad // tile_b

    need_tiled = (
        2 * tile_b * lane_F * x_it                     # double-buffered x tiles
        + _round_up(D, 8) * lane_H * mm_it             # w1 (resident)
        + 3 * 8 * lane_H * 4                           # gamma / beta / w2 row
        + B_pad * lane_H * 4                           # h_all scratch (resident)
        + B_pad * 128 * 4                              # resident output block
        + 4 * tile_b * lane_H * 4                      # per-step temporaries
        + (4 << 20))

    kernel = functools.partial(
        _bfc_tiled_kernel, d=D, tile_b=tile_b, num_tiles=num_tiles,
        valid_b=B, matmul_dtype=matmul_dtype)

    out = pl.pallas_call(
        kernel,
        out_shape=jax.ShapeDtypeStruct((B_pad, 1), jnp.float32),
        grid=(num_tiles,),
        in_specs=[
            pl.BlockSpec((tile_b, F), lambda i: (i, 0)),   # streamed x tiles
            pl.BlockSpec((D, H), lambda i: (0, 0)),        # w1 (resident)
            pl.BlockSpec((1, H), lambda i: (0, 0)),        # gamma
            pl.BlockSpec((1, H), lambda i: (0, 0)),        # beta
            pl.BlockSpec((1, H), lambda i: (0, 0)),        # w2 row
            smem_spec,                                     # b2 scalar
        ],
        out_specs=pl.BlockSpec((B_pad, 1), lambda i: (0, 0)),  # resident output
        scratch_shapes=[
            pltpu.VMEM((B_pad, H), jnp.float32),           # h_all
            pltpu.VMEM((1, H), jnp.float32),               # sum
            pltpu.VMEM((1, H), jnp.float32),               # sum of squares
        ],
        compiler_params=pltpu.CompilerParams(
            dimension_semantics=("arbitrary",),
            vmem_limit_bytes=int(min(max(32 << 20, need_tiled), cap))),
    )(x, w1, gamma, beta, w2_row, b2)
    return out[:B]


# ---------------------------------------------------------------------------
# Params / reference
# ---------------------------------------------------------------------------

def init_params(key, input_size, hidden_size=128):
    """Deterministic init mimicking PyTorch nn.Linear defaults."""
    k1, k2, k3, k4 = jax.random.split(key, 4)
    bound1 = 1.0 / jnp.sqrt(input_size)
    bound2 = 1.0 / jnp.sqrt(hidden_size)
    return {
        "w1": jax.random.uniform(k1, (input_size, hidden_size), jnp.float32, -bound1, bound1),
        # b1 kept for module fidelity / the reference; the kernel drops it
        # because training-mode BatchNorm cancels it exactly.
        "b1": jax.random.uniform(k2, (1, hidden_size), jnp.float32, -bound1, bound1),
        "gamma": jnp.ones((1, hidden_size), jnp.float32),
        "beta": jnp.zeros((1, hidden_size), jnp.float32),
        "w2": jax.random.uniform(k3, (hidden_size, 1), jnp.float32, -bound2, bound2),
        "b2": jax.random.uniform(k4, (1, 1), jnp.float32, -bound2, bound2),
    }


def _reference(x, p):
    # Pure-JAX reference, faithful to the PyTorch module (including b1).
    if x.ndim == 3:
        x = x[:, -1, :-2]
    h = x @ p["w1"] + p["b1"]
    mean = jnp.mean(h, axis=0, keepdims=True)
    var = jnp.mean((h - mean) ** 2, axis=0, keepdims=True)
    h = (h - mean) / jnp.sqrt(var + 1e-5) * p["gamma"] + p["beta"]
    h = jnp.where(h > 0, h, 0.01 * h)
    return jax.nn.sigmoid(h @ p["w2"] + p["b2"])


if __name__ == "__main__":
    key = jax.random.PRNGKey(0)
    k_x, k_p, k_x2 = jax.random.split(key, 3)

    # Small 3-D input [B, S, F]; forward uses x[:, -1, :-2] -> [B, F-2]
    B, S, F = 8, 8, 34
    input_size = F - 2          # 32
    hidden_size = 128

    x3 = jax.random.normal(k_x, (B, S, F), dtype=jnp.float32)
    params = init_params(k_p, input_size, hidden_size)
    ref3 = _reference(x3, params)

    # 1) Single full-batch block, f32 MXU path: tight check (residual diff is
    #    only the BN-cancelled b1 drop + mul/reduce form of Linear-2).
    out_f32 = jax.block_until_ready(
        basic_fully_connection(x3, params, matmul_dtype=jnp.float32))
    assert out_f32.shape == (B, 1), out_f32.shape
    assert jnp.allclose(out_f32, ref3, atol=1e-4, rtol=1e-4), \
        float(jnp.max(jnp.abs(out_f32 - ref3)))

    # 2) bf16 input + bf16 MXU (default): x is DMA'd as bf16 (no wrapper
    #    upcast), f32 accumulation and f32 post-matmul math.
    out_bf16 = jax.block_until_ready(
        basic_fully_connection(x3.astype(jnp.bfloat16), params))
    assert out_bf16.shape == (B, 1), out_bf16.shape
    assert jnp.allclose(out_bf16, ref3, atol=2.5e-2, rtol=2.5e-2), \
        float(jnp.max(jnp.abs(out_bf16 - ref3)))

    # 3) Batch-tiled path (2-D input): grid over batch tiles, two-pass BN
    #    stats in VMEM scratch, h kept resident, output written on last step.
    B2 = 256
    x2 = jax.random.normal(k_x2, (B2, input_size), dtype=jnp.float32)
    ref2 = _reference(x2, params)
    out_tiled = jax.block_until_ready(
        basic_fully_connection(x2, params, matmul_dtype=jnp.float32,
                               batch_tile=64, force_tiled=True))
    assert out_tiled.shape == (B2, 1), out_tiled.shape
    assert jnp.allclose(out_tiled, ref2, atol=1e-3, rtol=1e-3), \
        float(jnp.max(jnp.abs(out_tiled - ref2)))

    print("KERNEL_OK")
</pallas_src>

<mosaic_0001>
module attributes {stable_mosaic.version = 11 : i64} {
  func.func @_bfc_single_kernel(%arg0: memref<8x34xf32, #tpu.memory_space<vmem>>, %arg1: memref<32x128xf32, #tpu.memory_space<vmem>>, %arg2: memref<1x128xf32, #tpu.memory_space<vmem>>, %arg3: memref<1x128xf32, #tpu.memory_space<vmem>>, %arg4: memref<1x128xf32, #tpu.memory_space<vmem>>, %arg5: memref<1xf32, #tpu.memory_space<smem>>, %arg6: memref<8x1xf32, #tpu.memory_space<vmem>>) attributes {dimension_semantics = [], scalar_prefetch = 0 : i64, scratch_operands = 0 : i64, tpu.core_type = #tpu.core_type<tc>} {
    %c0 = arith.constant 0 : index
    %c0_0 = arith.constant 0 : index
    %0 = vector.load %arg0[%c0, %c0_0] : memref<8x34xf32, #tpu.memory_space<vmem>>, vector<8x32xf32>
    %c0_1 = arith.constant 0 : index
    %c0_2 = arith.constant 0 : index
    %1 = vector.load %arg1[%c0_1, %c0_2] : memref<32x128xf32, #tpu.memory_space<vmem>>, vector<32x128xf32>
    %cst = arith.constant dense<0.000000e+00> : vector<8x128xf32>
    %2 = tpu.matmul %0, %1, %cst {dimension_numbers = #tpu.dot_dimension_numbers<[1], [0], [0], [1], [0, 0, 1, 1], [], []>} : vector<8x32xf32>, vector<32x128xf32>, vector<8x128xf32> -> vector<8x128xf32>
    %cst_3 = arith.constant dense<0.000000e+00> : vector<128xf32>
    %3 = vector.multi_reduction <add>, %2, %cst_3 [0] : vector<8x128xf32> to vector<128xf32>
    %4 = vector.shape_cast %3 : vector<128xf32> to vector<1x128xf32>
    %cst_4 = arith.constant 8.000000e+00 : f32
    %5 = vector.broadcast %cst_4 : f32 to vector<1x128xf32>
    %6 = arith.divf %4, %5 : vector<1x128xf32>
    %7 = vector.broadcast %6 : vector<1x128xf32> to vector<8x128xf32>
    %8 = arith.subf %2, %7 : vector<8x128xf32>
    %9 = arith.mulf %8, %8 : vector<8x128xf32>
    %cst_5 = arith.constant dense<0.000000e+00> : vector<128xf32>
    %10 = vector.multi_reduction <add>, %9, %cst_5 [0] : vector<8x128xf32> to vector<128xf32>
    %11 = vector.shape_cast %10 : vector<128xf32> to vector<1x128xf32>
    %cst_6 = arith.constant 8.000000e+00 : f32
    %12 = vector.broadcast %cst_6 : f32 to vector<1x128xf32>
    %13 = arith.divf %11, %12 : vector<1x128xf32>
    %c0_7 = arith.constant 0 : index
    %c0_8 = arith.constant 0 : index
    %14 = vector.load %arg2[%c0_7, %c0_8] : memref<1x128xf32, #tpu.memory_space<vmem>>, vector<1x128xf32>
    %cst_9 = arith.constant 9.99999974E-6 : f32
    %15 = vector.broadcast %cst_9 : f32 to vector<1x128xf32>
    %16 = arith.addf %13, %15 : vector<1x128xf32>
    %17 = math.rsqrt %16 : vector<1x128xf32>
    %18 = arith.mulf %14, %17 : vector<1x128xf32>
    %19 = vector.broadcast %18 : vector<1x128xf32> to vector<8x128xf32>
    %20 = arith.mulf %8, %19 : vector<8x128xf32>
    %c0_10 = arith.constant 0 : index
    %c0_11 = arith.constant 0 : index
    %21 = vector.load %arg3[%c0_10, %c0_11] : memref<1x128xf32, #tpu.memory_space<vmem>>, vector<1x128xf32>
    %22 = vector.broadcast %21 : vector<1x128xf32> to vector<8x128xf32>
    %23 = arith.addf %20, %22 : vector<8x128xf32>
    %cst_12 = arith.constant 0.000000e+00 : f32
    %24 = vector.broadcast %cst_12 : f32 to vector<8x128xf32>
    %25 = arith.cmpf ogt, %23, %24 : vector<8x128xf32>
    %cst_13 = arith.constant 0.00999999977 : f32
    %26 = vector.broadcast %cst_13 : f32 to vector<8x128xf32>
    %27 = arith.mulf %26, %23 : vector<8x128xf32>
    %28 = arith.select %25, %23, %27 : vector<8x128xi1>, vector<8x128xf32>
    %c0_14 = arith.constant 0 : index
    %c0_15 = arith.constant 0 : index
    %29 = vector.load %arg4[%c0_14, %c0_15] : memref<1x128xf32, #tpu.memory_space<vmem>>, vector<1x128xf32>
    %30 = vector.broadcast %29 : vector<1x128xf32> to vector<8x128xf32>
    %31 = arith.mulf %28, %30 : vector<8x128xf32>
    %cst_16 = arith.constant dense<0.000000e+00> : vector<8xf32>
    %32 = vector.multi_reduction <add>, %31, %cst_16 [1] : vector<8x128xf32> to vector<8xf32>
    %33 = vector.shape_cast %32 : vector<8xf32> to vector<8x1xf32>
    %c0_17 = arith.constant 0 : index
    %34 = memref.load %arg5[%c0_17] : memref<1xf32, #tpu.memory_space<smem>>
    %35 = vector.broadcast %34 : f32 to vector<8x1xf32>
    %36 = arith.addf %33, %35 : vector<8x1xf32>
    %37 = arith.negf %36 : vector<8x1xf32>
    %38 = math.exp %37 : vector<8x1xf32>
    %cst_18 = arith.constant 1.000000e+00 : f32
    %39 = vector.broadcast %cst_18 : f32 to vector<8x1xf32>
    %40 = arith.addf %39, %38 : vector<8x1xf32>
    %41 = arith.divf %39, %40 : vector<8x1xf32>
    %c0_19 = arith.constant 0 : index
    %c0_20 = arith.constant 0 : index
    %42 = vector.load %arg6[%c0_19, %c0_20] : memref<8x1xf32, #tpu.memory_space<vmem>>, vector<8x1xf32>
    tpu.vector_store %arg6[%c0_19, %c0_20], %41 {strides = array<i32>} : memref<8x1xf32, #tpu.memory_space<vmem>>, vector<8x1xf32>,
    return
  }
}

</mosaic_0001>

<bundles_post_ra>
// kernel: tpu_custom_call.1
= control target key start
LH: loop header
LB: loop body
LE: loop exit
PB: predicated region body
PF: predicated region fallthrough
CT: control target
= control target key end

     0   :  { %12 = vsyncpa [#allocation4], 0  ;;  %s298_s0 = inlined_call_operand.hbm [shape: f32[8,34], index: 0, kind: input, shape index: {}]   ;;  %s299_s1 = inlined_call_operand.hbm [shape: f32[32,128], index: 1, kind: input, shape index: {}]   ;;  %s300_s2 = inlined_call_operand.vmem [shape: f32[1,128], index: 2, kind: input, shape index: {}]   ;;  %s301_s3 = inlined_call_operand.vmem [shape: f32[1,128], index: 3, kind: input, shape index: {}]   ;;  %s302_s4 = inlined_call_operand.vmem [shape: f32[1,128], index: 4, kind: input, shape index: {}]   ;;  %s303_s5 = inlined_call_operand.<no memory space> [shape: f32[1], index: 5, kind: input, shape index: {}]   ;;  %s304_s6 = inlined_call_operand.vmem [shape: f32[8,1], index: 6, kind: output, shape index: {}]  }
   0x1   :  { %s19_s23 = sshll.u32 %s298_s0, 4  ;;  %s20_s23 = int_to_ptr.hbm [resolvable:$true] %s19_s23 }
   0x2   :  { %13 = vsyncpa [#allocation6], 0  ;;  %s237_s24 = smov [#allocation3]   ;;  %s29_s28 = sshll.u32 %s299_s1, 4  ;;  %s30_s28 = int_to_ptr.hbm [resolvable:$true] %s29_s28 }
   0x3   :  { %s21_s25 = sshll.u32 %s237_s24, 4  ;;  %s238_s29 = smov [#allocation5]   ;;  %s22_s25 = int_to_ptr.vmem [resolvable:$true] %s21_s25 }
   0x4   :  { %24 = dma.hbm_to_vmem [thread:$0]  %s20_s23, 128, %s22_s25, [#allocation4]  }
   0x5   :  { %s31_s30 = sshll.u32 %s238_s29, 4  ;;  %s239_s7 = smov 128   ;;  %s32_s30 = int_to_ptr.vmem [resolvable:$true] %s31_s30 }
   0x6   :  { %s240_s8 = smov 8  }
   0x7   :  { %37 = dma.hbm_to_vmem [thread:$0]  %s30_s28, 512, %s32_s30, [#allocation6], %s239_s7, %s239_s7, %s240_s8  }
   0x8   :  { %233 = dma.done.wait [#allocation4], 128  }
   0x9   :  { %234 = vsyncadd [#allocation4], 4294967168 }
   0xa   :  { %235 = dma.done.wait [#allocation6], 512  }
   0xb   :  { %236 = vsyncadd [#allocation6], 4294966784  ;;  %v58_v0 = vld [vmem:[#allocation5 + $0x18] sm:$0xff]  ;;  %v57_v1 = vld [vmem:[#allocation5 + $0x10] sm:$0xff]  ;;  %vm59_vm0 = vcmask 261120   ;;  %v241_v5 = vmov 8.0   ;;  %v139_v47 = vstv %s303_s5 }
   0xc   :  { %75 = vmatpush.msra.mxu0 %v58_v0  ;;  %v56_v2 = vld [vmem:[#allocation5 + $0x8] sm:$0xff]  ;;  %v55_v3 = vld [vmem:[#allocation5] sm:$0xff]  ;;  %v54_v4 = vld [vmem:[#allocation3] sm:$0xff]  ;;  %177 = vrcp.f32 %v241_v5  ;;  %vm160_vm9 = vcmask 7168  }
   0xd   :  { %v106_v35 = vld [vmem:[%s300_s2] sm:$0x1] }
   0xe   :  { %76 = vmatpush.msra.mxu0 %v57_v1  ;;  %v175_v40 = vld [vmem:[%s301_s3] ss:$0 sm:$0xff] }
   0xf   :  { %v176_v43 = vld [vmem:[%s302_s4] ss:$0 sm:$0xff] }
  0x10   :  { %77 = vmatpush.msra.mxu0 %v56_v2 }
  0x12   :  { %78 = vmatpush.msra.mxu0 %v55_v3  ;;  %v178_v6 = vpop.eup %177 }
  0x13   :  { %168 = vmatmul.msk.f32.vlgmr.msra.gmra.mxu0 %vm59_vm0, %v54_v4  ;;  %v90_v7 = vmul.f32 8.0, %v178_v6  ;;  %vm94_vm1 = vweird.f32 %v178_v6 }
  0x15   :  { %v91_v8 = vsub.f32 1.0, %v90_v7 }
  0x17   :  { %v92_v11 = vmul.f32 %v178_v6, %v91_v8 }
  0x19   :  { %v93_v14 = vadd.f32 %v178_v6, %v92_v11 }
  0x1b   :  { %v95_v17 = vsel %vm94_vm1, %v178_v6, %v93_v14 }
  0x90   :  { %v80_v9 = vpop.f32.mrf.mxu0 }
  0x91   :  { %v83_v10 = vrot.slane %v80_v9, 4 }
  0x93   :  { %v84_v12 = vadd.f32 %v83_v10, %v80_v9 }
  0x95   :  { %v85_v13 = vrot.slane %v84_v12, 2 }
  0x97   :  { %v86_v15 = vadd.f32 %v85_v13, %v84_v12 }
  0x99   :  { %v87_v16 = vrot.slane %v86_v15, 1 }
  0x9b   :  { %v88_v18 = vadd.f32 %v87_v16, %v86_v15 }
  0x9d   :  { %v96_v19 = vmul.f32 %v95_v17, %v88_v18 }
  0x9f   :  { %v97_v20 = vsub.f32 %v80_v9, %v96_v19 }
  0xa1   :  { %v98_v21 = vmul.f32 %v97_v20, %v97_v20 }
  0xa3   :  { %v99_v22 = vrot.slane %v98_v21, 4 }
  0xa5   :  { %v100_v23 = vadd.f32 %v99_v22, %v98_v21 }
  0xa7   :  { %v101_v24 = vrot.slane %v100_v23, 2 }
  0xa9   :  { %v102_v25 = vadd.f32 %v101_v24, %v100_v23 }
  0xab   :  { %v103_v26 = vrot.slane %v102_v25, 1 }
  0xad   :  { %v104_v27 = vadd.f32 %v103_v26, %v102_v25 }
  0xaf   :  { %v105_v28 = vmul.f32 %v104_v27, %v95_v17 }
  0xb1   :  { %v107_v29 = vadd.f32 1e-05, %v105_v28 }
  0xb3   :  { %179 = vrsqrt.f32 %v107_v29  ;;  %vm114_vm3 = vweird.f32 %v107_v29 }
  0xb9   :  { %v180_v30 = vpop.eup %179 }
  0xba   :  { %v109_v31 = vmul.f32 %v180_v30, %v107_v29  ;;  %vm115_vm2 = vweird.f32 %v180_v30 }
  0xbb   :  { %vm116_vm4 = vmor %vm114_vm3, %vm115_vm2 }
  0xbc   :  { %v110_v32 = vmul.f32 %v180_v30, %v109_v31 }
  0xbe   :  { %v111_v33 = vmul.f32 0.5, %v110_v32 }
  0xc0   :  { %v112_v34 = vsub.f32 1.5, %v111_v33 }
  0xc2   :  { %v113_v36 = vmul.f32 %v180_v30, %v112_v34 }
  0xc4   :  { %v117_v37 = vsel %vm116_vm4, %v180_v30, %v113_v36 }
  0xc5   :  { %v118_v38 = vmul.f32 %v117_v37, %v106_v35 }
  0xc7   :  { %v120_v39 = vperm.slane %v118_v38, 0 }
  0xc9   :  { %v122_v41 = vmul.f32 %v120_v39, %v97_v20 }
  0xcb   :  { %v127_v42 = vadd.f32 %v175_v40, %v122_v41 }
  0xcd   :  { %vm128_vm5 = vcmp.gt.f32.partialorder %v127_v42, 0.0  ;;  %v129_v44 = vmul.f32 0.01, %v127_v42 }
  0xcf   :  { %v130_v45 = vsel %vm128_vm5, %v127_v42, %v129_v44 }
  0xd0   :  { %v135_v46 = vmul.f32 %v176_v43, %v130_v45 }
  0xd2   :  { %136 = vadd.xlane.f32.xlu0 %v135_v46 }
 0x145   :  { %v137_v48 = vpop.xlane.xlu0 %136 }
 0x146   :  { %v140_v49 = vadd.f32 %v139_v47, %v137_v48 }
 0x148   :  { %v169_v50 = vmul.f32 -1.442695, %v140_v49 }
 0x14a   :  { %181 = vpow2.f32 %v169_v50 }
 0x150   :  { %v182_v51 = vpop.eup %181 }
 0x151   :  { %v144_v52 = vadd.f32 1.0, %v182_v51 }
 0x153   :  { %183 = vrcp.f32 %v144_v52  ;;  %v156_v56 = vand.u32 2147483648, %v144_v52  ;;  %v154_v58 = vand.u32 2147483647, %v144_v52  ;;  %vm150_vm7 = vweird.f32 %v144_v52 }
 0x155   :  { %v157_v60 = vor.u32 1.1754944e-38, %v156_v56  ;;  %vm155_vm10 = vcmp.eq.f32.partialorder %v154_v58, 8.507059e+37 }
 0x159   :  { %v184_v53 = vpop.eup %183 }
 0x15a   :  { %v146_v54 = vmul.f32 %v184_v53, %v144_v52  ;;  %vm151_vm6 = vweird.f32 %v184_v53 }
 0x15b   :  { %vm152_vm8 = vmor %vm150_vm7, %vm151_vm6 }
 0x15c   :  { %v147_v55 = vsub.f32 1.0, %v146_v54 }
 0x15e   :  { %v148_v57 = vmul.f32 %v184_v53, %v147_v55 }
 0x160   :  { %v149_v59 = vadd.f32 %v184_v53, %v148_v57 }
 0x162   :  { %v153_v61 = vsel %vm152_vm8, %v184_v53, %v149_v59 }
 0x163   :  { %v158_v62 = vsel %vm155_vm10, %v157_v60, %v153_v61 }
 0x164   :  { %161 = vst.msk [vmem:[%s304_s6] sm:$0xff] %vm160_vm9, %v158_v62 }
 0x165   :  { %166 = vsyncpa [#allocation4], 1 }
 0x166   :  { %167 = vsyncpa [#allocation6], 1 }

</bundles_post_ra>
